<compile_context>
chip_gen: v5e
topology: v5e:2x2
jax: 0.10.0
libtpu: 0.0.40
codegen_flags: <defaults>
</compile_context>

<pallas_src>
import functools

import jax
import jax.numpy as jnp
from jax.experimental import pallas as pl
from jax.experimental.pallas import tpu as pltpu


def feature_embedding_kernel(x_ref, w_ref, b_ref, o_ref):
    # x_ref: (TB, F)   w_ref: (F, F*D) block-expanded   b_ref: (1, F*D)
    # o_ref: (TB, F*D) lane-dense output tile.
    y = jnp.dot(
        x_ref[...],                      # (TB, F) f32
        w_ref[...],                      # (F, F*D) f32, resident across steps
        preferred_element_type=jnp.float32,
        precision=jax.lax.Precision.HIGHEST,  # keep f32 accuracy vs. reference
    )
    o_ref[...] = (y + b_ref[...]).astype(o_ref.dtype)


def _round_down_8(n):
    return max(8, (n // 8) * 8)


def feature_embedding(x, weight, bias, *, block_b=4096, out_dtype=None):
    """x: (B, F), weight: (F, D), bias: (F, D) -> (B, F, D)."""
    B, F = x.shape
    F2, D = weight.shape
    assert F2 == F and bias.shape == (F, D)
    FD = F * D
    if out_dtype is None:
        out_dtype = x.dtype   # pass jnp.bfloat16 to halve HBM write traffic

    # Host-side parameter prep (free relative to the kernel):
    #   W_exp[f, g*D + d] = W[f, d] if f == g else 0   -> (F, F*D)
    # so x @ W_exp produces the lane-dense (B, F*D) embedding slab on the MXU.
    eye = jnp.eye(F, dtype=weight.dtype)
    w_exp = (eye[:, :, None] * weight[None, :, :]).reshape(F, FD)
    b_flat = bias.reshape(1, FD)

    # ---- batch tile sizing ----
    tb = min(block_b, B)
    # Ensure >= 2 grid steps whenever the batch allows it: v7x's two
    # TensorCores both get work, and the BlockSpec pipeline can overlap
    # DMA with compute.
    if B >= 16:
        tb = min(tb, _round_down_8(B // 2))
    if tb != B:
        tb = _round_down_8(tb)
    grid = (pl.cdiv(B, tb),)

    # ---- explicit VMEM budget (sets vmem_limit_bytes) ----
    # The (tb, F) x block is lane-padded F -> 128 in VMEM: count it as tb*128.
    out_itemsize = jnp.dtype(out_dtype).itemsize
    x_itemsize = jnp.dtype(x.dtype).itemsize
    vmem_bytes = (
        2 * tb * max(128, F) * x_itemsize      # x double-buffer (lane-padded)
        + 2 * tb * FD * out_itemsize           # output double-buffer
        + F * FD * 4 + FD * 4                  # resident W_exp + bias
    )
    vmem_limit = int(min(48 << 20, max(16 << 20, int(1.3 * vmem_bytes))))

    out_flat = pl.pallas_call(
        feature_embedding_kernel,
        out_shape=jax.ShapeDtypeStruct((B, FD), out_dtype),
        grid_spec=pltpu.PrefetchScalarGridSpec(
            num_scalar_prefetch=0,
            grid=grid,
            in_specs=[
                pl.BlockSpec((tb, F), lambda i: (i, 0)),    # x, tiled over batch
                pl.BlockSpec((F, FD), lambda i: (0, 0)),    # W_exp, resident
                pl.BlockSpec((1, FD), lambda i: (0, 0)),    # bias, resident
            ],
            out_specs=pl.BlockSpec((tb, FD), lambda i: (i, 0)),
        ),
        compiler_params=pltpu.CompilerParams(
            dimension_semantics=("parallel",),   # batch tiles are independent
            vmem_limit_bytes=vmem_limit,
        ),
    )(x, w_exp, b_flat)

    return out_flat.reshape(B, F, D)


def reference(x, weight, bias):
    # Pure-JAX reference of the PyTorch forward.
    return x[:, :, None] * weight[None, :, :] + bias[None, :, :]


if __name__ == "__main__":
    batch = 16
    num_features = 8
    embedding_dim = 32

    key = jax.random.PRNGKey(0)
    kx, kw, kb = jax.random.split(key, 3)

    # Deterministic synthetic parameters: nn.Linear(1, D) per feature.
    # PyTorch default init with fan_in=1 is U(-1, 1); replicated here.
    weight = jax.random.uniform(kw, (num_features, embedding_dim),
                                minval=-1.0, maxval=1.0, dtype=jnp.float32)
    bias = jax.random.uniform(kb, (num_features, embedding_dim),
                              minval=-1.0, maxval=1.0, dtype=jnp.float32)
    x = jax.random.normal(kx, (batch, num_features), dtype=jnp.float32)

    ref = reference(x, weight, bias)

    # f32 path: exact match with the PyTorch/JAX reference.
    out = feature_embedding(x, weight, bias)
    out = jax.block_until_ready(out)
    assert out.shape == (batch, num_features, embedding_dim)
    assert jnp.allclose(out, ref, atol=1e-6, rtol=1e-6)

    # bf16-output path (recommended for throughput): looser tolerance expected.
    out_bf16 = feature_embedding(x, weight, bias, out_dtype=jnp.bfloat16)
    out_bf16 = jax.block_until_ready(out_bf16)
    assert jnp.allclose(out_bf16.astype(jnp.float32), ref, atol=2e-2, rtol=2e-2)

    print("KERNEL_OK")
</pallas_src>

<mosaic_0001>
module attributes {stable_mosaic.version = 11 : i64} {
  func.func @feature_embedding_kernel(%arg0: i32, %arg1: memref<8x8xf32, #tpu.memory_space<vmem>>, %arg2: memref<8x256xf32, #tpu.memory_space<vmem>>, %arg3: memref<1x256xf32, #tpu.memory_space<vmem>>, %arg4: memref<8x256xf32, #tpu.memory_space<vmem>>) attributes {dimension_semantics = [#tpu.dimension_semantics<parallel>], iteration_bounds = array<i64: 2>, scalar_prefetch = 0 : i64, scratch_operands = 0 : i64, tpu.core_type = #tpu.core_type<tc>, window_params = [{transform_indices = @transform_0, window_bounds = array<i64: 8, 8>}, {pipeline_mode = #tpu.pipeline_mode<synchronous>, transform_indices = @transform_1, window_bounds = array<i64: 8, 256>}, {pipeline_mode = #tpu.pipeline_mode<synchronous>, transform_indices = @transform_2, window_bounds = array<i64: 1, 256>}, {transform_indices = @transform_3, window_bounds = array<i64: 8, 256>}]} {
    %c0 = arith.constant 0 : index
    %c0_0 = arith.constant 0 : index
    %0 = vector.load %arg1[%c0, %c0_0] : memref<8x8xf32, #tpu.memory_space<vmem>>, vector<8x8xf32>
    %c0_1 = arith.constant 0 : index
    %c0_2 = arith.constant 0 : index
    %1 = vector.load %arg2[%c0_1, %c0_2] : memref<8x256xf32, #tpu.memory_space<vmem>>, vector<8x256xf32>
    %cst = arith.constant dense<0.000000e+00> : vector<8x256xf32>
    %2 = tpu.matmul %0, %1, %cst {dimension_numbers = #tpu.dot_dimension_numbers<[1], [0], [0], [1], [0, 0, 1, 1], [], []>, precision = #tpu.contract_precision<fp32>} : vector<8x8xf32>, vector<8x256xf32>, vector<8x256xf32> -> vector<8x256xf32>
    %c0_3 = arith.constant 0 : index
    %c0_4 = arith.constant 0 : index
    %3 = vector.load %arg3[%c0_3, %c0_4] : memref<1x256xf32, #tpu.memory_space<vmem>>, vector<1x256xf32>
    %4 = vector.broadcast %3 : vector<1x256xf32> to vector<8x256xf32>
    %5 = arith.addf %2, %4 : vector<8x256xf32>
    %c0_5 = arith.constant 0 : index
    %c0_6 = arith.constant 0 : index
    %6 = vector.load %arg4[%c0_5, %c0_6] : memref<8x256xf32, #tpu.memory_space<vmem>>, vector<8x256xf32>
    tpu.vector_store %arg4[%c0_5, %c0_6], %5 {strides = array<i32>} : memref<8x256xf32, #tpu.memory_space<vmem>>, vector<8x256xf32>,
    return
  }
  func.func @transform_0(%arg0: i32) -> (i32, i32) {
    %c0_i32 = arith.constant 0 : i32
    %c0_i32_0 = arith.constant 0 : i32
    return %arg0, %c0_i32 : i32, i32
  }
  func.func @transform_1(%arg0: i32) -> (i32, i32) {
    %c0_i32 = arith.constant 0 : i32
    %c0_i32_0 = arith.constant 0 : i32
    %c0_i32_1 = arith.constant 0 : i32
    return %c0_i32, %c0_i32_0 : i32, i32
  }
  func.func @transform_2(%arg0: i32) -> (i32, i32) {
    %c0_i32 = arith.constant 0 : i32
    %c0_i32_0 = arith.constant 0 : i32
    %c0_i32_1 = arith.constant 0 : i32
    return %c0_i32, %c0_i32_0 : i32, i32
  }
  func.func @transform_3(%arg0: i32) -> (i32, i32) {
    %c0_i32 = arith.constant 0 : i32
    %c0_i32_0 = arith.constant 0 : i32
    return %arg0, %c0_i32 : i32, i32
  }
}

</mosaic_0001>

<bundles_post_ra>
// kernel: tpu_custom_call.1
= control target key start
LH: loop header
LB: loop body
LE: loop exit
PB: predicated region body
PF: predicated region fallthrough
CT: control target
= control target key end

     0   :  { %8 = vsyncpa [#allocation3], 0  ;;  %s782_s0 = inlined_call_operand.vmem [shape: f32[16,8], index: 0, kind: input, shape index: {}]   ;;  %s783_s1 = inlined_call_operand.vmem [shape: f32[8,256], index: 1, kind: input, shape index: {}]   ;;  %s784_s2 = inlined_call_operand.vmem [shape: f32[1,256], index: 2, kind: input, shape index: {}]   ;;  %s785_s3 = inlined_call_operand.hbm [shape: f32[16,256], index: 3, kind: output, shape index: {}]  }
   0x1   :  { %10 = vsyncpa [#allocation3 + $0x1], 0  ;;  %s684_s12 = smov 0   ;;  %s686_s13 = smov 0  }
   0x2   :  { %s688_s14 = smov 0   ;;  %s690_s15 = smov 0  }
   0x3 LB: > { %s705_s16 = sadd.s32 4294967295, %s662_s15   ;;  %s549_s17 = sadd.s32 4294967294, %s662_s15   ;;  %s662_s15 = sphi %s690_s15, %s791_s15   ;;  %s658_s14 = sphi %s688_s14, %s790_s14   ;;  %s654_s13 = sphi %s686_s13, %s789_s13   ;;  %s650_s12 = sphi %s684_s12, %s788_s12  }
   0x4   : > { %s709_s18 = sadd.s32 1, %s662_s15   ;;  %s91_s19 = sadd.s32 1, %s658_s14 }
   0x5   : > { %s88_s20 = ssub.s32 %s662_s15, %s709_s18  ;;  %p101_p0 = scmp.ne.s32.totalorder %s658_s14, %s654_s13 }
   0x6   : > { %p89_p1 = scmp.eq.s32.totalorder %s88_s20, 0  ;;  %p102_p2 = scmp.eq.s32.totalorder %s705_s16, 1 }
   0x7   : > { %p107_p3 = scmp.ne.s32.totalorder %s654_s13, %s650_s12  ;;  %p108_p4 = scmp.eq.s32.totalorder %s549_s17, 1 }
   0x8   : > { %s720_s21 = scalar_select %p89_p1, %s658_s14, %s91_s19  }
   0x9   : > { %p722_p5 = por %p102_p2, %p101_p0  ;;  %p726_p6 = por %p108_p4, %p107_p3 }
   0xa   : > { %p552_p7 = scmp.ge.s32.totalorder %s662_s15, 1  ;;  %p139_p8 = scmp.lt.s32.totalorder %s662_s15, 3 }
   0xc   : > { %p140_p9 = pnand %p552_p7, %p139_p8 }
   0xd   : > { %p162_p10 = scmp.lt.s32.totalorder (!%p140_p9), %s705_s16, 1  ;;  %s159_s8 = sand.u32 (!%p140_p9), 1, %s654_s13  }
   0xe   : > { %143 = sbr.rel (%p140_p9) target bundleno = 188 (0xbc), region = 32  ;;  %s553_s9 = sshll.u32 (!%p140_p9), %s159_s8, 4 }
   0xf   : > { %s161_s10 = scalar_lea.vmem (!%p140_p9), [#allocation2], %s553_s9  ;;  %s560_s11 = sshll.u32 (!%p140_p9), %s705_s16, 4 }
  0x10   : > { %s485_s20 = scalar_lea.hbm (!%p140_p9), %s785_s3, %s560_s11  ;;  %s487_s24 = sshll.u32 (!%p140_p9), %s161_s10, 4  ;;  %s488_s24 = int_to_ptr.vmem [resolvable:$true] %s487_s24 }
  0x11   : > { %s489_s25 = sshll.u32 (!%p140_p9), %s485_s20, 4  ;;  %s620_s30 = scalar_lea.hbm (!%p140_p9), %s785_s3, 32  ;;  %s490_s25 = int_to_ptr.hbm [resolvable:$true] %s489_s25 }
  0x12   : > { %s614_s26 = sshra.s32 (!%p140_p9), %s490_s25, 4  ;;  %s615_s26 = int_to_ptr.hbm [resolvable:$true] %s614_s26 }
  0x13   : > { %v167_v0 = vld [vmem:[%s783_s1] sm:$0xff]  ;;  %v168_v1 = vld [vmem:[%s783_s1 + $0x8] sm:$0xff]  ;;  %s163_s28 = scalar_select %p162_p10, %s705_s16, 1  ;;  %vm175_vm0 = vcmask 64512  }
  0x14   : > { %v194_v2 = vand.u32 4294901760, %v167_v0  ;;  %v340_v3 = vand.u32 4294901760, %v168_v1  ;;  %v169_v19 = vld [vmem:[%s784_s2] sm:$0x3]  ;;  %s474_s16 = scalar_lea.sflag [#allocation3], %s159_s8  ;;  %s616_s27 = scalar_lea.hbm %s615_s26, 16 }
  0x15   : > { %s554_s29 = sshll.u32 %s163_s28, 3  ;;  %v171_v21 = vperm.slane %v169_v19, 0  ;;  %v172_v28 = vperm.slane %v169_v19, 1  ;;  %p617_p11 = scmp.ne.s32.totalorder %s615_s26, %s616_s27 }
  0x16   : > { %v221_v4 = vsub.f32 %v167_v0, %v194_v2  ;;  %195 = vmatpush.msra.mxu0 %v194_v2  ;;  %271 = vmatpush.msra.mxu3 %v194_v2  ;;  %v367_v5 = vsub.f32 %v168_v1, %v340_v3  ;;  %s165_s5 = scalar_lea.vmem %s782_s0, %s554_s29  ;;  %p621_p0 = scmp.lt.s32.totalorder %s615_s26, %s785_s3 }
  0x17   : > { %v166_v8 = vld [vmem:[%s165_s5] sm:$0xff]  ;;  %p618_p12 = pnand %p617_p11, %p722_p5  ;;  %p622_p1 = scmp.lt.s32.totalorder %s620_s30, %s616_s27 }
  0x18   : > { %248 = vmatpush.msra.mxu2 %v221_v4  ;;  %v222_v6 = vand.u32 4294901760, %v221_v4  ;;  %v368_v7 = vand.u32 4294901760, %v367_v5  ;;  %v177_v9 = vsel %vm175_vm0, %v166_v8, 0 }
  0x19   : > { %v196_v12 = vand.u32 4294901760, %v177_v9  ;;  %p619_p13 = pneg %p618_p12  ;;  %p623_p2 = por %p622_p1, %p621_p0 }
  0x1a   : > { %341 = vmatpush.msrb.mxu2 %v340_v3  ;;  %297 = vmatpush.msrb.mxu0 %v222_v6  ;;  %v369_v10 = vsub.f32 %v367_v5, %v368_v7  ;;  %v223_v11 = vsub.f32 %v221_v4, %v222_v6 }
  0x1b   : > { %v197_v15 = vsub.f32 %v177_v9, %v196_v12  ;;  %p624_p3 = pnand %p623_p2, %p619_p13 }
  0x1c   : > { %v370_v13 = vand.u32 4294901760, %v369_v10  ;;  %v224_v14 = vand.u32 4294901760, %v223_v11 }
  0x1d   : > { %251 = vmatmul.f32.vlgmr.msra.gmra.mxu2 %v197_v15  ;;  %v198_v16 = vand.u32 4294901760, %v197_v15 }
  0x1e   : > { %371 = vmatpush.msrb.mxu3 %v370_v13  ;;  %225 = vmatpush.msra.mxu1 %v224_v14 }
  0x1f   : > { %227 = vmatmul.f32.vlgmr.msra.gmra.mxu1 %v196_v12  ;;  %443 = vmatpush.msra.mxu2 %v368_v7  ;;  %v199_v17 = vsub.f32 %v197_v15, %v198_v16 }
  0x20   : > { %319 = vmatpush.msrb.mxu1 %v194_v2  ;;  %275 = vmatmul.f32.vlgmr.msra.gmra.mxu3 %v198_v16 }
  0x21   : > { %465 = vmatpush.msra.mxu3 %v340_v3  ;;  %v200_v18 = vand.u32 4294901760, %v199_v17 }
  0x22   : > { %417 = vmatpush.msra.mxu1 %v340_v3 }
  0x23   : > { %201 = vmatmul.f32.vlgmr.msra.gmra.mxu0 %v200_v18 }
  0x24   : > { %394 = vmatpush.msra.mxu0 %v367_v5 }
  0x25   : > { %347 = vmatmul.f32.vlgmr.msrb.gmra.mxu2 %v200_v18 }
  0x27   : > { %321 = vmatmul.f32.vlgmr.msrb.gmra.mxu1 %v196_v12 }
  0x28   : > { %373 = vmatmul.f32.vlgmr.msrb.gmra.mxu3 %v196_v12 }
  0x2b   : > { %299 = vmatmul.f32.vlgmr.msrb.gmra.mxu0 %v196_v12 }
  0x2d   : > { %445 = vmatmul.f32.vlgmr.msra.gmra.mxu2 %v196_v12 }
  0x2f   : > { %421 = vmatmul.f32.vlgmr.msra.gmra.mxu1 %v198_v16 }
  0x30   : > { %467 = vmatmul.f32.vlgmr.msra.gmra.mxu3 %v196_v12 }
  0x33   : > { %397 = vmatmul.f32.vlgmr.msra.gmra.mxu0 %v197_v15 }
  0x9c   : > { %v228_v20 = vpop.f32.mrf.mxu1 }
  0xa0   : > { %v202_v22 = vpop.f32.mrf.mxu0  ;;  %v252_v23 = vpop.f32.mrf.mxu2 }
  0xa1   : > { %v203_v24 = vadd.f32 %v202_v22, %v171_v21 }
  0xa3   : > { %v276_v25 = vpop.f32.mrf.mxu3  ;;  %v229_v26 = vadd.f32 %v228_v20, %v203_v24 }
  0xa4   : > { %v322_v29 = vpop.f32.mrf.mxu1 }
  0xa5   : > { %v253_v27 = vadd.f32 %v252_v23, %v229_v26 }
  0xa7   : > { %v277_v30 = vadd.f32 %v276_v25, %v253_v27 }
  0xa8   : > { %v300_v31 = vpop.f32.mrf.mxu0  ;;  %v348_v32 = vpop.f32.mrf.mxu2 }
  0xa9   : > { %v301_v33 = vadd.f32 %v300_v31, %v277_v30  ;;  %v349_v34 = vadd.f32 %v348_v32, %v172_v28 }
  0xab   : > { %v374_v35 = vpop.f32.mrf.mxu3  ;;  %v323_v36 = vadd.f32 %v322_v29, %v301_v33 }
  0xac   : > { %v375_v37 = vadd.f32 %v374_v35, %v349_v34  ;;  %v422_v39 = vpop.f32.mrf.mxu1 }
  0xad   : > { %471 = vst [vmem:[%s161_s10] sm:$0xff] %v323_v36 }
  0xb0   : > { %v398_v38 = vpop.f32.mrf.mxu0  ;;  %v446_v41 = vpop.f32.mrf.mxu2 }
  0xb1   : > { %v399_v40 = vadd.f32 %v398_v38, %v375_v37 }
  0xb3   : > { %v423_v42 = vadd.f32 %v422_v39, %v399_v40  ;;  %v468_v43 = vpop.f32.mrf.mxu3 }
  0xb5   : > { %v447_v44 = vadd.f32 %v446_v41, %v423_v42 }
  0xb7   : > { %v469_v45 = vadd.f32 %v468_v43, %v447_v44 }
  0xb9   : > { %472 = vst [vmem:[%s161_s10 + $0x8] sm:$0xff] %v469_v45 }
  0xba   : > { %627 = shalt.err (!%p624_p3)
}
  0xbb   : > { %561 = dma.vmem_to_hbm [thread:$0]  (%p722_p5), %s488_s24, 256, %s490_s25, %s474_s16  }
  0xbc PF: > { %p567_p4 = scmp.ge.s32.totalorder %s662_s15, 2  ;;  %s501_s6 = sand.u32 1, %s650_s12  }
  0xbd   : > { %s502_s7 = scalar_lea.sflag [#allocation3], %s501_s6 }
  0xbe   : > { %p564_p7 = pnand %p567_p4, %p726_p6 }
  0xc0   : > { %p565_p8 = pneg %p564_p7 }
  0xc2   : > { %645 = dma.done.wait (%p565_p8), %s502_s7, 256  }
  0xc3   : > { %647 = vsyncadd (%p565_p8), %s502_s7, 4294967040  ;;  %p13_p9 = scmp.ge.s32.totalorder %s709_s18, 4   ;;  %s788_s12 = smov %s654_s13 }
  0xc4   : > { %s789_s13 = smov %s658_s14  ;;  %s790_s14 = smov %s720_s21 }
  0xc5   : > { %s791_s15 = smov %s709_s18  ;;  %15 = sbr.rel (!%p13_p9) target bundleno = 3 (0x3), region = 67 }
  0xca   :  { %508 = vsyncpa [#allocation3], 1 }
  0xcb   :  { %510 = vsyncpa [#allocation3 + $0x1], 1 }

</bundles_post_ra>
